<compile_context>
chip_gen: v7x
topology: tpu7x:2x2x1
jax: 0.10.0
libtpu: 0.0.40
codegen_flags: <defaults>
</compile_context>

<pallas_src>
import jax
import jax.numpy as jnp
from jax.experimental import pallas as pl
from jax.experimental.pallas import tpu as pltpu


def _round_up(x, m):
    return (x + m - 1) // m * m


def _decoder_kernel(mix_ref, mask_ref, norm_ref, wt_ref, out_ref):
    # mix_ref : (TILE_K, N)                  mixture_w[b, k_tile]         (f32 or bf16)
    # mask_ref: (TILE_K, nspk*N)  lane-packed speakers (N % 128 == 0), or
    #           (TILE_K, nspk, N) 4-D fallback
    # norm_ref: (TILE_K, 1)                  norm_coef[b, k_tile]
    # wt_ref  : (N, L) bf16                  basis_signals.weight.T
    # out_ref : (nspk, TILE_K, L)            est_source[b, :, k_tile, :]  (pre-permuted)
    nspk = out_ref.shape[0]
    n = mix_ref.shape[1]

    # Elementwise math stays f32 on the VPU (safe on v5e, which has no bf16 VALU);
    # inputs may arrive as f32 or bf16 from HBM.
    mix = mix_ref[...].astype(jnp.float32)        # (TILE_K, N)
    norm = norm_ref[...].astype(jnp.float32)      # (TILE_K, 1)

    for s in range(nspk):                         # tiny static unroll over speakers
        if mask_ref.ndim == 2:
            m = mask_ref[:, s * n:(s + 1) * n]    # 128-aligned lane slice
        else:
            m = mask_ref[:, s, :]                 # 4-D fallback (N not a lane multiple)
        src = mix * m.astype(jnp.float32)                          # (TILE_K, N) f32
        est = jnp.dot(src.astype(jnp.bfloat16), wt_ref[...],       # bf16 MXU operands,
                      preferred_element_type=jnp.float32)          # f32 accumulation
        # Apply norm_coef to the f32 matmul result (same order as the PyTorch module).
        out_ref[s] = (est * norm).astype(out_ref.dtype)


def prepare_decoder_weight(weight):
    """One-time weight prep: nn.Linear(N, L).weight [L, N] -> bf16 [N, L].

    Call once and reuse the result across decoder_forward calls (pass via weight_t=).
    """
    return jnp.transpose(weight, (1, 0)).astype(jnp.bfloat16)


def _vmem_budget_bytes(tile_k, N, nspk, L, in_itemsize, out_itemsize, lane_pack):
    """Explicit VMEM budget from the actual (padded) tile footprint."""
    n_lanes = _round_up(N, 128)
    l_lanes = _round_up(L, 128)
    if lane_pack:
        mask_tile = tile_k * nspk * N * in_itemsize
    else:
        mask_tile = tile_k * _round_up(nspk, 8) * n_lanes * in_itemsize
    per_step = (tile_k * n_lanes * in_itemsize            # mixture tile
                + mask_tile                               # mask tile
                + tile_k * 128 * in_itemsize              # norm tile (lane-padded)
                + nspk * tile_k * l_lanes * out_itemsize)  # output tile
    weight = _round_up(N, 8) * l_lanes * 2                 # bf16 weight (resident)
    # Double-buffered pipeline + compiler headroom; stay well under v7x's 64 MiB part.
    return min(_round_up(2 * (per_step + weight) + (4 << 20), 1 << 20), 64 << 20)


def decoder_forward(mixture_w, est_mask, norm_coef, weight=None, *,
                    weight_t=None, max_tile_k=1024):
    """
    Args:
        mixture_w: [B, K, N]   (f32 or bf16)
        est_mask:  [B, K, nspk, N]
        norm_coef: [B, K, 1]
        weight:    [L, N]  (nn.Linear(N, L).weight)  -- or pass a prepared weight_t
        weight_t:  optional pre-prepared bf16 [N, L] from prepare_decoder_weight()
        max_tile_k: K-tile cap; sweep 512-1024 on v6e, 1024-2048 on v7x.
    Returns:
        est_source: [B, nspk, K, L]  (same dtype as mixture_w)
    """
    B, K, N = mixture_w.shape
    nspk = est_mask.shape[2]
    if weight_t is None:
        weight_t = prepare_decoder_weight(weight)
    L = weight_t.shape[1]
    out_dtype = mixture_w.dtype

    in_itemsize = jnp.dtype(mixture_w.dtype).itemsize
    out_itemsize = jnp.dtype(out_dtype).itemsize

    # K tiling: large MXU M tile, sublane-aligned for the input dtype. No input padding:
    # the last (ragged) K tile relies on Pallas OOB handling -- garbage rows only ever
    # feed output rows that are masked on write (no cross-row reduction in the kernel).
    sub = max(8, 32 // in_itemsize)          # 8 for f32, 16 for bf16
    tile_k = min(_round_up(max_tile_k, sub), _round_up(K, sub))
    grid = (B, pl.cdiv(K, tile_k))

    lane_pack = (N % 128 == 0)
    if lane_pack:
        # Contiguous collapse of (nspk, N) into lanes: metadata-only reshape; per-speaker
        # slices inside the kernel are 128-aligned.
        mask_in = est_mask.reshape(B, K, nspk * N)
        mask_spec = pl.BlockSpec((None, tile_k, nspk * N), lambda b, kt: (b, kt, 0))
    else:
        # Fallback for N not a lane multiple: keep est_mask 4-D, full-extent (nspk, N)
        # trailing block (correct; pays a relayout per speaker, documented trade-off).
        mask_in = est_mask
        mask_spec = pl.BlockSpec((None, tile_k, nspk, N), lambda b, kt: (b, kt, 0, 0))

    cost = pl.CostEstimate(
        flops=2 * B * K * nspk * N * L,
        transcendentals=0,
        bytes_accessed=(mixture_w.size * in_itemsize
                        + est_mask.size * jnp.dtype(est_mask.dtype).itemsize
                        + norm_coef.size * jnp.dtype(norm_coef.dtype).itemsize
                        + weight_t.size * 2
                        + B * nspk * K * L * out_itemsize))

    return pl.pallas_call(
        _decoder_kernel,
        out_shape=jax.ShapeDtypeStruct((B, nspk, K, L), out_dtype),
        grid_spec=pltpu.PrefetchScalarGridSpec(
            num_scalar_prefetch=0,
            grid=grid,
            in_specs=[
                pl.BlockSpec((None, tile_k, N), lambda b, kt: (b, kt, 0)),
                mask_spec,
                pl.BlockSpec((None, tile_k, 1), lambda b, kt: (b, kt, 0)),
                # Constant block index -> weight DMA'd into VMEM once for the whole grid.
                pl.BlockSpec((N, L), lambda b, kt: (0, 0)),
            ],
            # Output written directly in the permuted [B, nspk, K, L] layout, un-padded
            # (block last dim == full L): fewer HBM bytes, no post-call slice kernel.
            out_specs=pl.BlockSpec((None, nspk, tile_k, L), lambda b, kt: (b, 0, kt, 0)),
        ),
        compiler_params=pltpu.CompilerParams(
            dimension_semantics=("parallel", "parallel"),
            vmem_limit_bytes=_vmem_budget_bytes(tile_k, N, nspk, L, in_itemsize,
                                                out_itemsize, lane_pack)),
        cost_estimate=cost,
    )(mixture_w, mask_in, norm_coef, weight_t)


def decoder_reference(mixture_w, est_mask, norm_coef, weight):
    """Pure-JAX reference matching the PyTorch module exactly (f32)."""
    source_w = mixture_w[:, :, None, :] * est_mask               # [B, K, nspk, N]
    est_source = jnp.einsum("bksn,ln->bksl", source_w, weight)   # Linear(N->L), no bias
    est_source = est_source * norm_coef[:, :, None, :]           # [B, K, nspk, L]
    return jnp.transpose(est_source, (0, 2, 1, 3))               # [B, nspk, K, L]


if __name__ == "__main__":
    master_key = jax.random.PRNGKey(0)

    def run_case(B, K, nspk, N, L, max_tile_k, key):
        k_mix, k_mask, k_norm, k_w = jax.random.split(key, 4)
        mixture_w = jax.random.normal(k_mix, (B, K, N), dtype=jnp.float32)
        est_mask = jax.nn.softmax(
            jax.random.normal(k_mask, (B, K, nspk, N), dtype=jnp.float32), axis=2)
        norm_coef = jnp.abs(jax.random.normal(k_norm, (B, K, 1), dtype=jnp.float32)) + 0.5
        # "basis_signals" weight, shape [L, N] like nn.Linear(N, L).weight
        weight = jax.random.normal(k_w, (L, N), dtype=jnp.float32) * (1.0 / jnp.sqrt(N))

        weight_t = prepare_decoder_weight(weight)   # one-time prep, reused across calls
        out = decoder_forward(mixture_w, est_mask, norm_coef,
                              weight_t=weight_t, max_tile_k=max_tile_k)
        out = jax.block_until_ready(out)

        ref = decoder_reference(mixture_w, est_mask, norm_coef, weight)
        assert out.shape == (B, nspk, K, L), out.shape
        max_err = float(jnp.max(jnp.abs(out - ref)))
        # bf16 MXU operands (f32 accumulation) vs f32 reference -> loose tolerance.
        assert jnp.allclose(out, ref, atol=5e-2, rtol=5e-2), \
            f"mismatch (B={B},K={K},N={N},L={L}): max_err={max_err}"

    # Main path: N % 128 == 0 -> lane-packed speakers; K=40 with tile_k=16 exercises the
    # ragged last K tile (no wrapper padding, OOB output rows masked by Pallas).
    run_case(B=2, K=40, nspk=2, N=128, L=40, max_tile_k=16,
             key=jax.random.fold_in(master_key, 0))
    # Fallback path: N not a lane multiple -> 4-D mask block, single K tile.
    run_case(B=2, K=40, nspk=2, N=96, L=40, max_tile_k=1024,
             key=jax.random.fold_in(master_key, 1))

    print("KERNEL_OK")
</pallas_src>

<mosaic_0001>
module attributes {stable_mosaic.version = 11 : i64} {
  func.func @_decoder_kernel(%arg0: i32, %arg1: i32, %arg2: memref<1x16x128xf32, #tpu.memory_space<vmem>>, %arg3: memref<1x16x256xf32, #tpu.memory_space<vmem>>, %arg4: memref<1x16x1xf32, #tpu.memory_space<vmem>>, %arg5: memref<128x40xbf16, #tpu.memory_space<vmem>>, %arg6: memref<1x2x16x40xf32, #tpu.memory_space<vmem>>) attributes {dimension_semantics = [#tpu.dimension_semantics<parallel>, #tpu.dimension_semantics<parallel>], iteration_bounds = array<i64: 2, 3>, scalar_prefetch = 0 : i64, scratch_operands = 0 : i64, tpu.core_type = #tpu.core_type<tc>, window_params = [{transform_indices = @transform_0, window_bounds = array<i64: 1, 16, 128>}, {transform_indices = @transform_1, window_bounds = array<i64: 1, 16, 256>}, {transform_indices = @transform_2, window_bounds = array<i64: 1, 16, 1>}, {pipeline_mode = #tpu.pipeline_mode<synchronous>, transform_indices = @transform_3, window_bounds = array<i64: 128, 40>}, {transform_indices = @transform_4, window_bounds = array<i64: 1, 2, 16, 40>}]} {
    %c0 = arith.constant 0 : index
    %c0_0 = arith.constant 0 : index
    %c0_1 = arith.constant 0 : index
    %0 = vector.load %arg2[%c0, %c0_0, %c0_1] : memref<1x16x128xf32, #tpu.memory_space<vmem>>, vector<1x16x128xf32>
    %1 = vector.shape_cast %0 : vector<1x16x128xf32> to vector<16x128xf32>
    %c0_2 = arith.constant 0 : index
    %c0_3 = arith.constant 0 : index
    %c0_4 = arith.constant 0 : index
    %2 = vector.load %arg4[%c0_2, %c0_3, %c0_4] : memref<1x16x1xf32, #tpu.memory_space<vmem>>, vector<1x16x1xf32>
    %3 = vector.shape_cast %2 : vector<1x16x1xf32> to vector<16x1xf32>
    %c0_5 = arith.constant 0 : index
    %c0_6 = arith.constant 0 : index
    %c0_7 = arith.constant 0 : index
    %4 = vector.load %arg3[%c0_5, %c0_6, %c0_7] : memref<1x16x256xf32, #tpu.memory_space<vmem>>, vector<1x16x128xf32>
    %5 = vector.shape_cast %4 : vector<1x16x128xf32> to vector<16x128xf32>
    %6 = arith.mulf %1, %5 : vector<16x128xf32>
    %7 = arith.truncf %6 : vector<16x128xf32> to vector<16x128xbf16>
    %c0_8 = arith.constant 0 : index
    %c0_9 = arith.constant 0 : index
    %8 = vector.load %arg5[%c0_8, %c0_9] : memref<128x40xbf16, #tpu.memory_space<vmem>>, vector<128x40xbf16>
    %cst = arith.constant dense<0.000000e+00> : vector<16x40xf32>
    %9 = tpu.matmul %7, %8, %cst {dimension_numbers = #tpu.dot_dimension_numbers<[1], [0], [0], [1], [0, 0, 1, 1], [], []>} : vector<16x128xbf16>, vector<128x40xbf16>, vector<16x40xf32> -> vector<16x40xf32>
    %10 = vector.broadcast %3 : vector<16x1xf32> to vector<16x40xf32>
    %11 = arith.mulf %9, %10 : vector<16x40xf32>
    %c0_10 = arith.constant 0 : index
    %c0_11 = arith.constant 0 : index
    %c0_12 = arith.constant 0 : index
    %c0_13 = arith.constant 0 : index
    %12 = vector.load %arg6[%c0_10, %c0_11, %c0_12, %c0_13] : memref<1x2x16x40xf32, #tpu.memory_space<vmem>>, vector<1x1x16x40xf32>
    %13 = vector.shape_cast %12 : vector<1x1x16x40xf32> to vector<16x40xf32>
    %14 = vector.shape_cast %11 : vector<16x40xf32> to vector<1x1x16x40xf32>
    tpu.vector_store %arg6[%c0_10, %c0_11, %c0_12, %c0_13], %14 {strides = array<i32>} : memref<1x2x16x40xf32, #tpu.memory_space<vmem>>, vector<1x1x16x40xf32>,
    %c0_14 = arith.constant 0 : index
    %c0_15 = arith.constant 0 : index
    %c128 = arith.constant 128 : index
    %15 = vector.load %arg3[%c0_14, %c0_15, %c128] : memref<1x16x256xf32, #tpu.memory_space<vmem>>, vector<1x16x128xf32>
    %16 = vector.shape_cast %15 : vector<1x16x128xf32> to vector<16x128xf32>
    %17 = arith.mulf %1, %16 : vector<16x128xf32>
    %18 = arith.truncf %17 : vector<16x128xf32> to vector<16x128xbf16>
    %c0_16 = arith.constant 0 : index
    %c0_17 = arith.constant 0 : index
    %19 = vector.load %arg5[%c0_16, %c0_17] : memref<128x40xbf16, #tpu.memory_space<vmem>>, vector<128x40xbf16>
    %cst_18 = arith.constant dense<0.000000e+00> : vector<16x40xf32>
    %20 = tpu.matmul %18, %19, %cst_18 {dimension_numbers = #tpu.dot_dimension_numbers<[1], [0], [0], [1], [0, 0, 1, 1], [], []>} : vector<16x128xbf16>, vector<128x40xbf16>, vector<16x40xf32> -> vector<16x40xf32>
    %21 = vector.broadcast %3 : vector<16x1xf32> to vector<16x40xf32>
    %22 = arith.mulf %20, %21 : vector<16x40xf32>
    %c0_19 = arith.constant 0 : index
    %c1 = arith.constant 1 : index
    %c0_20 = arith.constant 0 : index
    %c0_21 = arith.constant 0 : index
    %23 = vector.load %arg6[%c0_19, %c1, %c0_20, %c0_21] : memref<1x2x16x40xf32, #tpu.memory_space<vmem>>, vector<1x1x16x40xf32>
    %24 = vector.shape_cast %23 : vector<1x1x16x40xf32> to vector<16x40xf32>
    %25 = vector.shape_cast %22 : vector<16x40xf32> to vector<1x1x16x40xf32>
    tpu.vector_store %arg6[%c0_19, %c1, %c0_20, %c0_21], %25 {strides = array<i32>} : memref<1x2x16x40xf32, #tpu.memory_space<vmem>>, vector<1x1x16x40xf32>,
    return
  }
  func.func @transform_0(%arg0: i32, %arg1: i32) -> (i32, i32, i32) {
    %c0_i32 = arith.constant 0 : i32
    %c0_i32_0 = arith.constant 0 : i32
    return %arg0, %arg1, %c0_i32 : i32, i32, i32
  }
  func.func @transform_1(%arg0: i32, %arg1: i32) -> (i32, i32, i32) {
    %c0_i32 = arith.constant 0 : i32
    %c0_i32_0 = arith.constant 0 : i32
    return %arg0, %arg1, %c0_i32 : i32, i32, i32
  }
  func.func @transform_2(%arg0: i32, %arg1: i32) -> (i32, i32, i32) {
    %c0_i32 = arith.constant 0 : i32
    %c0_i32_0 = arith.constant 0 : i32
    return %arg0, %arg1, %c0_i32 : i32, i32, i32
  }
  func.func @transform_3(%arg0: i32, %arg1: i32) -> (i32, i32) {
    %c0_i32 = arith.constant 0 : i32
    %c0_i32_0 = arith.constant 0 : i32
    %c0_i32_1 = arith.constant 0 : i32
    return %c0_i32, %c0_i32_0 : i32, i32
  }
  func.func @transform_4(%arg0: i32, %arg1: i32) -> (i32, i32, i32, i32) {
    %c0_i32 = arith.constant 0 : i32
    %c0_i32_0 = arith.constant 0 : i32
    %c0_i32_1 = arith.constant 0 : i32
    return %arg0, %c0_i32, %arg1, %c0_i32_0 : i32, i32, i32, i32
  }
}

</mosaic_0001>

<bundles_post_ra>
// kernel: tpu_custom_call.1
= control target key start
LH: loop header
LB: loop body
LE: loop exit
PB: predicated region body
PF: predicated region fallthrough
CT: control target
= control target key end

     0   :  { %9 = vsyncpa [#allocation3], 0  ;;  %s1407_s0 = inlined_call_operand.hbm [shape: f32[2,40,128], index: 0, kind: input, shape index: {}]   ;;  %s1408_s1 = inlined_call_operand.vmem [shape: f32[2,40,256], index: 1, kind: input, shape index: {}]   ;;  %s1409_s2 = inlined_call_operand.vmem [shape: f32[2,40,1], index: 2, kind: input, shape index: {}]   ;;  %s1410_s3 = inlined_call_operand.vmem [shape: bf16[128,40], index: 3, kind: input, shape index: {}]   ;;  %s1411_s4 = inlined_call_operand.hbm [shape: f32[2,2,40,40], index: 4, kind: output, shape index: {}]  }
   0x1   :  { %11 = vsyncpa [#allocation3 + $0x1], 0 }
   0x2   :  { %12 = vsyncpa [#allocation4], 0 }
   0x3   :  { %14 = vsyncpa [#allocation4 + $0x1], 0  ;;  %s1143_s15 = smov 0   ;;  %s1145_s16 = smov 0  }
   0x4   :  { %s1147_s17 = smov 0   ;;  %s1149_s18 = smov 0  }
   0x5   :  { %s1151_s19 = smov 0   ;;  %s1153_s20 = smov 0  }
   0x6   :  { %s1155_s21 = smov 0   ;;  %s1157_s22 = smov 0  }
   0x7 LB: > { %s796_s23 = sadd.s32 4294967295, %s1104_s22   ;;  %s797_s24 = sadd.s32 4294967294, %s1104_s22   ;;  %s1104_s22 = sphi %s1157_s22, %s20_s22   ;;  %s1100_s21 = sphi %s1155_s21, %s1429_s21   ;;  %s1096_s20 = sphi %s1153_s20, %s1428_s20   ;;  %s1092_s19 = sphi %s1151_s19, %s1427_s19   ;;  %s1088_s18 = sphi %s1149_s18, %s1426_s18   ;;  %s1084_s17 = sphi %s1147_s17, %s1425_s17   ;;  %s1080_s16 = sphi %s1145_s16, %s1424_s16   ;;  %s1076_s15 = sphi %s1143_s15, %s1423_s15  }
   0x8   : > { %s29_s25 = sadd.s32 1, %s1096_s20  ;;  %s32_s26 = sadd.s32 1, %s1100_s21 }
   0x9   : > { %p30_p0 = scmp.ge.s32.totalorder %s29_s25, 3  ;;  %p48_p1 = scmp.ne.s32.totalorder %s1084_s17, %s1080_s16 }
   0xa   : > { %p49_p2 = scmp.eq.s32.totalorder %s1104_s22, 0  ;;  %p54_p5 = scmp.ne.s32.totalorder %s1080_s16, %s1076_s15 }
   0xb   : > { %s1431_s25 = smov (%p30_p0, %s29_s25), 0  ;;  %s1433_s26 = smov (!%p30_p0, %s32_s26), %s1100_s21 }
   0xc   : > { %1414 = sst [smem:[#allocation10_spill]] %s1431_s25  ;;  %s37_s27 = ssub.s32 %s1096_s20, %s1431_s25 }
   0xd   : > { %p1195_p3 = por %p49_p2, %p48_p1  ;;  %p34_p4 = scmp.ge.s32.totalorder %s1433_s26, 2 }
   0xe   : > { %p55_p6 = scmp.eq.s32.totalorder %s796_s23, 0  ;;  %p157_p7 = scmp.eq.s32.totalorder %s796_s23, 5 }
   0xf   : > { %s1435_s26 = smov (%p34_p4, %s1433_s26), 0  ;;  %p163_p10 = scmp.eq.s32.totalorder %s797_s24, 5 }
  0x10   : > { %1416 = sst [smem:[#allocation11_spill]] %s1435_s26  ;;  %p1203_p8 = por %p55_p6, %p54_p5 }
  0x11   : > { %p1207_p9 = por %p157_p7, %p48_p1  ;;  %s36_s5 = ssub.s32 %s1100_s21, %s1435_s26 }
  0x12   : > { %s38_s6 = sor.u32 %s37_s27, %s36_s5  ;;  %s41_s7 = sadd.s32 1, %s1084_s17 }
  0x13   : > { %p39_p11 = scmp.eq.s32.totalorder %s38_s6, 0  ;;  %p1214_p12 = por %p163_p10, %p54_p5 }
  0x14   : > { %p799_p13 = scmp.ge.s32.totalorder %s1104_s22, 6 }
  0x15   : > { %s1419_s8 = scalar_select %p1214_p12, 1, 0 }
  0x16   : > { %s1219_s9 = scalar_select %p39_p11, %s1084_s17, %s41_s7  }
  0x17   : > { %182 = sbr.rel (%p799_p13) target bundleno = 67 (0x43), region = 20 }
  0x1e   : > { %185 = sbr.rel (!%p1195_p3) target bundleno = 67 (0x43), region = 24  ;;  %s186_s10 = sand.u32 (%p1195_p3), 1, %s1084_s17  }
  0x1f   : > { %s801_s11 = sshll.u32 (%p1195_p3), %s1096_s20, 1  ;;  %s800_s12 = sshll.u32 (%p1195_p3), %s186_s10, 4 }
  0x20   : > { %s192_s13 = ssub.s32 (%p1195_p3), 5, %s801_s11  ;;  %s1229_s24 = scalar_lea.sflag (%p1195_p3), [#allocation3], %s186_s10 }
  0x21   : > { %p193_p0 = scmp.lt.s32.totalorder (%p1195_p3), %s192_s13, 2  ;;  %s190_s27 = scalar_lea.vmem (%p1195_p3), [#allocation2], %s800_s12 }
  0x25   : > { %s1437_s13 = smov (!%p193_p0, %s192_s13), 2 }
  0x26   : > { %s1226_s14 = sshll.u32 %s1437_s13, 7 }
  0x27   : > { %s197_s23 = ssub.s32 256, %s1226_s14 }
  0x28   : > { %198 = vsyncadd %s1229_s24, %s197_s23  ;;  %p803_p1 = scmp.ne.s32.totalorder %s1226_s14, 0  ;;  %s903_s28 = smul.u32 5, %s1100_s21 }
  0x29   : > { %s205_s5 = sshll.u32 %s190_s27, 4  ;;  %s1234_s5 = int_to_ptr.vmem [resolvable:$true] %s205_s5 }
  0x2a   : > { %s201_s6 = sadd.s32 %s903_s28, %s801_s11  ;;  %s1010_s11 = scalar_lea.hbm %s1407_s0, 1280 }
  0x2b   : > { %s804_s7 = sshll.u32 %s201_s6, 7 }
  0x2c   : > { %s1239_s25 = scalar_lea.hbm %s1407_s0, %s804_s7 }
  0x2d   : > { %s1006_s10 = scalar_lea.hbm %s1239_s25, %s1226_s14  ;;  %p1011_p5 = scmp.lt.u32.totalorder %s1239_s25, %s1407_s0 }
  0x2e   : > { %p1007_p2 = scmp.ne.s32.totalorder %s1239_s25, %s1006_s10  ;;  %p1012_p6 = scmp.lt.u32.totalorder %s1010_s11, %s1006_s10 }
  0x2f   : > { %p1014_p10 = scmp.lt.u32.totalorder %s1006_s10, %s1239_s25 }
  0x30   : > { %p1008_p3 = pnand %p1007_p2, %p803_p1  ;;  %p1013_p7 = por %p1012_p6, %p1011_p5 }
  0x32   : > { %p1009_p4 = pneg %p1008_p3  ;;  %p1015_p11 = por %p1014_p10, %p1013_p7 }
  0x34   : > { %p1016_p13 = pnand %p1015_p11, %p1009_p4 }
  0x36   : > { %1019 = shalt.err (!%p1016_p13)
}
  0x37   : > { %s1020_s26 = scalar_lea.vmem %s1234_s5, %s1226_s14  ;;  %s1106_s6 = smov [#allocation2]  }
  0x38   : > { %p1021_p0 = scmp.ne.s32.totalorder %s1234_s5, %s1020_s26  ;;  %s1024_s7 = sshll.u32 %s1106_s6, 4  ;;  %s1025_s7 = int_to_ptr.vmem [resolvable:$false] %s1024_s7 }
  0x39   : > { %s1026_s13 = scalar_lea.vmem %s1025_s7, 512  ;;  %p1027_p12 = scmp.lt.s32.totalorder %s1234_s5, %s1025_s7 }
  0x3a   : > { %p1022_p2 = pnand %p1021_p0, %p803_p1  ;;  %p1028_p5 = scmp.lt.s32.totalorder %s1026_s13, %s1020_s26 }
  0x3c   : > { %p1023_p3 = pneg %p1022_p2  ;;  %p1029_p6 = por %p1028_p5, %p1027_p12 }
  0x3e   : > { %p1030_p7 = pnand %p1029_p6, %p1023_p3 }
  0x40   : > { %1033 = shalt.err (!%p1030_p7)
}
  0x41   : > { %s1107_s10 = smov 128   ;;  %s1108_s12 = smov 8  }
  0x42   : > { %211 = dma.hbm_to_vmem [thread:$0]  (%p803_p1), %s1239_s25, %s1226_s14, %s1234_s5, %s1229_s24, %s1107_s10, %s1107_s10, %s1108_s12  }
  0x43 PF: > { %p807_p4 = scmp.ge.s32.totalorder %s1104_s22, 1  ;;  %p258_p10 = scmp.lt.s32.totalorder %s1104_s22, 7 }
  0x45   : > { %p259_p11 = pnand %p807_p4, %p258_p10 }
  0x46   : > { %s1269_s23 = sand.u32 (!%p259_p11), 1, %s1080_s16  }
  0x47   : > { %262 = sbr.rel (%p259_p11) target bundleno = 347 (0x15b), region = 36  ;;  %s808_s11 = sshll.u32 (!%p259_p11), %s1269_s23, 4 }
  0x48   : > { %s265_s27 = scalar_lea.sflag (!%p259_p11), [#allocation3], %s1269_s23  ;;  %s1273_s28 = scalar_lea.vmem (!%p259_p11), [#allocation2], %s808_s11 }
  0x4e   : > { %1067 = dma.done.wait (%p1203_p8), %s265_s27, 256  }
  0x4f   : > { %1069 = vsyncadd (%p1203_p8), %s265_s27, 4294967040  ;;  %v1109_v0 = vmov 0.0   ;;  %vm1110_vm0 = vmmov 0   ;;  %v1111_v1 = vmov 0   ;;  %s1284_s25 = sshll.u32 %s1088_s18, 1  ;;  %p332_p8 = scmp.lt.s32.totalorder %s1092_s19, 1 }
  0x50   : > { %863 = vmatprep.subr.bf16.mxu0 %v1109_v0  ;;  %883 = vmatprep.subr.bf16.mxu1 %v1109_v0  ;;  %v990_v2 = vld [vmem:[%s1410_s3] sm:$0xff]   ;;  %v992_v4 = vld [vmem:[%s1410_s3 + $0x8] sm:$0xff]   ;;  %p334_p12 = scmp.lt.s32.totalorder %s1284_s25, 4  ;;  %v994_v6 = vld [vmem:[%s1410_s3 + $0x10] sm:$0xff]   ;;  %vm497_vm1 = vcmask 326656  }
  0x51   : > { %879 = vmatprep.mubr.msk.bf16.mxu0 %vm1110_vm0, %v1109_v0  ;;  %899 = vmatprep.mubr.msk.bf16.mxu1 %vm1110_vm0, %v1109_v0  ;;  %v991_v3 = vld [vmem:[%s1410_s3] sm:$0xff]   ;;  %v993_v5 = vld [vmem:[%s1410_s3 + $0x8] sm:$0xff]   ;;  %s333_s13 = scalar_select %p332_p8, %s1092_s19, 1  ;;  %v995_v7 = vld [vmem:[%s1410_s3 + $0x10] sm:$0xff]  }
  0x52   : > { %989 = vset.pattern.permute.xlu0 %v1111_v1  ;;  %864 = vmatpush3.bf16.msra.mxu0 %v990_v2  ;;  %s335_s27 = scalar_select %p334_p12, %s1284_s25, 4  ;;  %v996_v8 = vld [vmem:[%s1410_s3 + $0x18] sm:$0xff]   ;;  %v998_v10 = vld [vmem:[%s1410_s3 + $0x20] sm:$0xff]   ;;  %v1000_v12 = vld [vmem:[%s1410_s3 + $0x28] sm:$0xff]  }
  0x53   : > { %884 = vmatpush3.bf16.msra.mxu1 %v991_v3  ;;  %865 = vmatprep.subr.bf16.mxu0 %v1109_v0  ;;  %s905_s10 = smul.u32 5, %s333_s13  ;;  %v997_v9 = vld [vmem:[%s1410_s3 + $0x18] sm:$0xff]   ;;  %v999_v11 = vld [vmem:[%s1410_s3 + $0x20] sm:$0xff]   ;;  %v1001_v14 = vld [vmem:[%s1410_s3 + $0x28] sm:$0xff]  }
  0x54   : > { %885 = vmatprep.subr.bf16.mxu1 %v1109_v0  ;;  %s904_s24 = smul.u32 10, %s333_s13  ;;  %s811_s18 = sshll.u32 %s335_s27, 1  ;;  %v1002_v15 = vld [vmem:[%s1410_s3 + $0x30] sm:$0xff]   ;;  %v372_v18 = vld [vmem:[%s1273_s28 + $0x8] sm:$0xff] }
  0x55   : > { %s357_s5 = sadd.s32 %s905_s10, %s335_s27  ;;  %v371_v16 = vld [vmem:[%s1273_s28] sm:$0xff]  ;;  %v1004_v26 = vld [vmem:[%s1410_s3 + $0x38] sm:$0xff]   ;;  %s616_s13 = scalar_lea.sflag [#allocation4], %s1269_s23 }
  0x56   : > { %866 = vmatpush3.bf16.msra.mxu0 %v992_v4  ;;  %s814_s11 = sshll.u32 %s357_s5, 3  ;;  %s338_s29 = sadd.s32 %s904_s24, %s811_s18  ;;  %v1003_v21 = vld [vmem:[%s1410_s3 + $0x30] sm:$0xff]   ;;  %v1005_v29 = vld [vmem:[%s1410_s3 + $0x38] sm:$0xff]  }
  0x57   : > { %886 = vmatpush3.bf16.msra.mxu1 %v993_v5  ;;  %867 = vmatprep.subr.bf16.mxu0 %v1109_v0  ;;  %s359_s7 = scalar_lea.vmem %s1409_s2, %s814_s11  ;;  %s812_s24 = sshll.u32 %s338_s29, 3 }
  0x58   : > { %887 = vmatprep.subr.bf16.mxu1 %v1109_v0  ;;  %v373_v13 = vld [vmem:[%s359_s7] sm:$0xff]  ;;  %s340_s11 = scalar_lea.vmem %s1408_s1, %s812_s24  ;;  %v374_v17 = vld [vmem:[%s359_s7 + $0x8] sm:$0xff]  ;;  %s809_s18 = sshll.u32 %s1269_s23, 5 }
  0x59   : > { %487 = vperm.xlu0 %989, %v373_v13   ;;  %v375_v19 = vld [vmem:[%s340_s11] sm:$0xff]  ;;  %v376_v20 = vld [vmem:[%s340_s11 + $0x10] sm:$0xff]  ;;  %v500_v22 = vld [vmem:[%s340_s11 + $0x8] sm:$0xff]  ;;  %s320_s12 = scalar_lea.vmem [#allocation5], %s809_s18 }
  0x5a   : > { %868 = vmatpush3.bf16.msra.mxu0 %v994_v6  ;;  %v501_v23 = vld [vmem:[%s340_s11 + $0x18] sm:$0xff]  ;;  %v377_v24 = vmul.f32 %v375_v19, %v371_v16  ;;  %v378_v25 = vmul.f32 %v376_v20, %v372_v18  ;;  %v502_v27 = vmul.f32 %v500_v22, %v371_v16 }
  0x5b   : > { %888 = vmatpush3.bf16.msra.mxu1 %v995_v7  ;;  %869 = vmatprep.subr.bf16.mxu0 %v1109_v0  ;;  %v503_v28 = vmul.f32 %v501_v23, %v372_v18 }
  0x5c   : > { %889 = vmatprep.subr.bf16.mxu1 %v1109_v0  ;;  %v379_v30 = vpack.c.bf16 %v378_v25, %v377_v24 }
  0x5d   : > { %492 = vperm.xlu0 %989, %v374_v17   ;;  %v504_v31 = vpack.c.bf16 %v503_v28, %v502_v27 }
  0x5e   : > { %870 = vmatpush3.bf16.msra.mxu0 %v996_v8 }
  0x5f   : > { %890 = vmatpush3.bf16.msra.mxu1 %v997_v9  ;;  %871 = vmatprep.subr.bf16.mxu0 %v1109_v0 }
  0x60   : > { %891 = vmatprep.subr.bf16.mxu1 %v1109_v0 }
  0x62   : > { %872 = vmatpush3.bf16.msra.mxu0 %v998_v10 }
  0x63   : > { %892 = vmatpush3.bf16.msra.mxu1 %v999_v11  ;;  %873 = vmatprep.subr.bf16.mxu0 %v1109_v0 }
  0x64   : > { %893 = vmatprep.subr.bf16.mxu1 %v1109_v0 }
  0x66   : > { %874 = vmatpush3.bf16.msra.mxu0 %v1000_v12 }
  0x67   : > { %894 = vmatpush3.bf16.msra.mxu1 %v1001_v14  ;;  %875 = vmatprep.subr.bf16.mxu0 %v1109_v0 }
  0x68   : > { %895 = vmatprep.subr.bf16.mxu1 %v1109_v0 }
  0x6a   : > { %876 = vmatpush3.bf16.msra.mxu0 %v1002_v15 }
  0x6b   : > { %896 = vmatpush3.bf16.msra.mxu1 %v1003_v21  ;;  %877 = vmatprep.subr.bf16.mxu0 %v1109_v0 }
  0x6c   : > { %897 = vmatprep.subr.bf16.mxu1 %v1109_v0 }
  0x6e   : > { %878 = vmatpush3.bf16.msra.mxu0 %v1004_v26 }
  0x6f   : > { %898 = vmatpush3.bf16.msra.mxu1 %v1005_v29 }
  0x71   : > { %880 = vmatmul.mubr.bf16.vlgmr.msra.gmra.mrb[0].mxu0 %v379_v30 }
  0x72   : > { %900 = vmatmul.mubr.bf16.vlgmr.msra.gmra.mrb[0].mxu1 %v504_v31 }
  0xd8   : > { %v488_v32 = vpop.permute.xlu0 %487 }
  0xdc   : > { %v493_v33 = vpop.permute.xlu0 %492 }
 0x144   : > { %v478_v34 = vpop.f32.mrb[0].mxu0  ;;  %622 = sbr.rel (!%p1207_p9) target bundleno = 347 (0x15b), region = 44 }
 0x145   : > { %v495_v35 = vmul.f32 %v488_v32, %v478_v34  ;;  %v603_v36 = vpop.f32.mrb[0].mxu1  ;;  %v881_v37 = vpop.f32.mrb[1].mxu0 }
 0x146   : > { %v610_v38 = vmul.f32 %v603_v36, %v488_v32  ;;  %v901_v39 = vpop.f32.mrb[1].mxu1  ;;  %v481_v40 = vpop.f32.mrb[2].mxu0 }
 0x147   : > { %498 = vst.msk [vmem:[%s320_s12] sm:$0xff] %vm497_vm1, %v495_v35  ;;  %v496_v41 = vmul.f32 %v493_v33, %v481_v40  ;;  %v606_v42 = vpop.f32.mrb[2].mxu1  ;;  %v882_v43 = vpop.f32.mrb[3].mxu0 }
 0x148   : > { %831 = vst.msk [vmem:[%s320_s12 + $0x10] sm:$0xff] %vm497_vm1, %v610_v38  ;;  %v611_v44 = vmul.f32 %v606_v42, %v493_v33  ;;  %v902_v45 = vpop.f32.mrb[3].mxu1 }
 0x149   : > { %499 = vst.msk [vmem:[%s320_s12 + $0x8] sm:$0xff] %vm497_vm1, %v496_v41 }
 0x14a   : > { %832 = vst.msk [vmem:[%s320_s12 + $0x18] sm:$0xff] %vm497_vm1, %v611_v44 }
 0x14b   : > { %s624_s10 = ssub.s32 5, %s1284_s25 }
 0x14c   : > { %p625_p1 = scmp.lt.s32.totalorder %s624_s10, 2 }
 0x14e   : > { %s1439_s10 = smov (!%p625_p1, %s624_s10), 2 }
 0x14f   : > { %s835_s27 = sshll.u32 %s1439_s10, 8 }
 0x150   : > { %s629_s11 = ssub.s32 512, %s835_s27 }
 0x151   : > { %630 = vsyncadd %s616_s13, %s629_s11  ;;  %p836_p13 = scmp.ne.s32.totalorder %s835_s27, 0  ;;  %s906_s29 = smul.u32 10, %s1092_s19 }
 0x152   : > { %s654_s14 = sshll.u32 %s320_s12, 4  ;;  %s1112_s30 = smov 256   ;;  %s655_s14 = int_to_ptr.vmem [resolvable:$true] %s654_s14 }
 0x153   : > { %s633_s26 = sadd.s32 %s906_s29, %s1284_s25  ;;  %661 = sst [smem:[#allocation7]] %s1112_s30 }
 0x154   : > { %s837_s6 = sshll.u32 %s633_s26, 7  ;;  %s1113_s5 = smov 640  }
 0x155   : > { %s635_s24 = scalar_lea.hbm %s1411_s4, %s837_s6  ;;  %663 = sst [smem:[#allocation7 + $0x1]] %s1113_s5 }
 0x156   : > { %665 = sst [smem:[#allocation7 + $0x2]] %s1439_s10  ;;  %s1114_s18 = smov 128  }
 0x157   : > { %667 = sst [smem:[#allocation7 + $0x3]] %s1114_s18  ;;  %s1115_s11 = smov 8  }
 0x158   : > { %669 = sst [smem:[#allocation7 + $0x4]] %s1114_s18  ;;  %s1116_s19 = smov [#allocation6]  }
 0x159   : > { %671 = sst [smem:[#allocation7 + $0x5]] %s1115_s11  ;;  %s1117_s12 = smov 0  }
 0x15a   : > { %673 = dma.general (%p836_p13), %s655_s14, %s835_s27, %s635_s24, %s616_s13, %s1116_s19, [#allocation7], %s1117_s12, 0  }
 0x15b PF: > { %p913_p9 = scmp.ge.s32.totalorder %s1104_s22, 2  ;;  %s682_s25 = sand.u32 1, %s1076_s15  }
 0x15c   : > { %p1420_p0 = scmp.ne.s32.totalorder %s1419_s8, 0  ;;  %s683_s10 = scalar_lea.sflag [#allocation4], %s682_s25 }
 0x15e   : > { %p910_p2 = pnand %p913_p9, %p1420_p0 }
 0x160   : > { %1071 = dma.done.wait (!%p910_p2), %s683_s10, 512  }
 0x161   : > { %1073 = vsyncadd (!%p910_p2), %s683_s10, 4294966784  ;;  %s20_s22 = sadd.s32 1, %s1104_s22   ;;  %s1421_s23 = sld [smem:[#allocation10_spill]] }
 0x162   : > { %p17_p3 = scmp.ge.s32.totalorder %s20_s22, 8   ;;  %s1422_s13 = sld [smem:[#allocation11_spill]] }
 0x163   : > { %s1423_s15 = smov %s1080_s16  ;;  %s1424_s16 = smov %s1084_s17 }
 0x164   : > { %s1425_s17 = smov %s1219_s9  ;;  %s1426_s18 = smov %s1096_s20 }
 0x165   : > { %s1427_s19 = smov %s1100_s21  ;;  %19 = sbr.rel (!%p17_p3) target bundleno = 7 (0x7), region = 93 }
 0x167   : > { %s1428_s20 = smov %s1421_s23 }
 0x168   : > { %s1429_s21 = smov %s1422_s13 }
 0x16c   :  { %688 = vsyncpa [#allocation3], 1 }
 0x16d   :  { %690 = vsyncpa [#allocation3 + $0x1], 1 }
 0x16e   :  { %691 = vsyncpa [#allocation4], 1 }
 0x16f   :  { %693 = vsyncpa [#allocation4 + $0x1], 1 }

</bundles_post_ra>
